<compile_context>
chip_gen: v6e
topology: v6e:2x2x1
jax: 0.10.0
libtpu: 0.0.40
codegen_flags: <defaults>
</compile_context>

<pallas_src>
import functools

import jax
import jax.numpy as jnp
from jax.experimental import pallas as pl
from jax.experimental.pallas import tpu as pltpu

_VMEM_STEP_BUDGET = 12 * 1024 * 1024   # double-buffered big-input bytes / grid step
_TM_MAX = 2048                         # largest M-tile we ever use
_OUT_LANES = 128                       # lane-dense partial-sum output width


def _round_up(x, m):
    return ((x + m - 1) // m) * m


def _choose_tm(m, n, la_itemsize):
    """M-tile size (None => one full-extent tile) and number of tiles."""
    per_row = (n + 1) * la_itemsize + n + 4        # la + bool mask + gm0 bytes
    cap = _VMEM_STEP_BUDGET // (2 * per_row)       # 2x: double-buffered pipeline
    cap = max(8, min(_TM_MAX, (cap // 8) * 8))
    if m <= cap:
        return None, 1                             # full-dim blocks, 1 tile
    n_tiles = -(-m // cap)                         # cdiv
    tm = _round_up(-(-m // n_tiles), 8)            # balanced tail, multiple of 8
    return tm, n_tiles


def _nll_partial_kernel(m_total, n_cols, need_row_mask,
                        la_ref, ga_ref, gm0_ref, out_ref):
    """Per-(batch, M-tile) partial sums of the matcher NLL loss.

    la_ref : (1, R_la, N+1) float  score block incl. dustbin column (the block
                                   may also contain the dustbin row / OOB tail
                                   rows -- they are masked or sliced away).
    ga_ref : (1, R, N)      bool   positive-match mask block.
    gm0_ref: (1, R, 1)      int32  gt_matches0 block (-1 == unmatched).
    out_ref: (1, 1, 1, 128) f32    lanes 0..3 = [pos_w, pos_l, neg0_w, neg0_l].
    """
    t = pl.program_id(1)

    ga = ga_ref[0]                                          # (R, N) bool
    gm0 = gm0_ref[0]                                        # (R, 1) int32
    r = ga.shape[0]

    la = la_ref[0][:r]                                      # (R, N+1)
    scores = la[:, :n_cols].astype(jnp.float32)             # (R, N)
    dust = la[:, n_cols:n_cols + 1].astype(jnp.float32)     # (R, 1) dustbin col

    pos_mask = ga
    neg0_mask = gm0 == -1                                   # (R, 1)
    if need_row_mask:  # trace-time constant: only emitted for ragged tails
        row_ids = t * r + jax.lax.broadcasted_iota(jnp.int32, (r, 1), 0)
        row_valid = row_ids < m_total                       # (R, 1)
        pos_mask = pos_mask & row_valid
        neg0_mask = neg0_mask & row_valid

    pos_w = jnp.sum(pos_mask.astype(jnp.float32), keepdims=True)        # (1,1)
    pos_l = jnp.sum(jnp.where(pos_mask, scores, 0.0), keepdims=True)
    neg0_w = jnp.sum(neg0_mask.astype(jnp.float32), keepdims=True)
    neg0_l = jnp.sum(jnp.where(neg0_mask, dust, 0.0), keepdims=True)

    # Pack the four partial sums into one lane-dense (1, 128) store.
    lane = jax.lax.broadcasted_iota(jnp.int32, (1, _OUT_LANES), 1)
    packed = (jnp.where(lane == 0, pos_w, 0.0)
              + jnp.where(lane == 1, pos_l, 0.0)
              + jnp.where(lane == 2, neg0_w, 0.0)
              + jnp.where(lane == 3, neg0_l, 0.0))
    out_ref[0, 0] = packed


def nll_loss_forward(log_assignment, gt_matches0, gt_matches1, gt_assignment,
                     weight=1.0, nll_balancing=0.5):
    """Mirrors NLLLoss.forward (weights=None path)."""
    B, M1, N1 = log_assignment.shape
    M, N = M1 - 1, N1 - 1

    la = log_assignment                                  # whole tensor, no copy
    ga = gt_assignment                                   # raw bool, 1 B/elem
    gm0 = gt_matches0.astype(jnp.int32).reshape(B, M, 1)  # tiny

    tm, n_tiles = _choose_tm(M, N, la.dtype.itemsize)
    if tm is None:
        # Single full-extent tile: block dims equal the array dims, so the
        # (8, 128) rule holds for any M / N and no block exceeds its array.
        la_block, ga_block, gm0_block = (1, M1, N1), (1, M, N), (1, M, 1)
        need_row_mask = False
    else:
        la_block, ga_block, gm0_block = (1, tm, N1), (1, tm, N), (1, tm, 1)
        need_row_mask = (M % tm) != 0

    in_specs = [
        pl.BlockSpec(la_block, lambda b, t: (b, t, 0)),
        pl.BlockSpec(ga_block, lambda b, t: (b, t, 0)),
        pl.BlockSpec(gm0_block, lambda b, t: (b, t, 0)),
    ]
    out_specs = pl.BlockSpec((1, 1, 1, _OUT_LANES), lambda b, t: (b, t, 0, 0))
    out_shape = jax.ShapeDtypeStruct((B, n_tiles, 1, _OUT_LANES), jnp.float32)

    bytes_accessed = int(B * (M1 * N1 * la.dtype.itemsize + M * N + M * 4)
                         + B * n_tiles * _OUT_LANES * 4)
    cost = pl.CostEstimate(flops=int(6 * B * M * N), transcendentals=0,
                           bytes_accessed=bytes_accessed)

    partials = pl.pallas_call(
        functools.partial(_nll_partial_kernel, M, N, need_row_mask),
        out_shape=out_shape,
        grid_spec=pltpu.PrefetchScalarGridSpec(
            num_scalar_prefetch=0,
            grid=(B, n_tiles),
            in_specs=in_specs,
            out_specs=out_specs),
        compiler_params=pltpu.CompilerParams(
            dimension_semantics=("parallel", "parallel"),
            vmem_limit_bytes=32 * 1024 * 1024),
        cost_estimate=cost,
    )(la, ga, gm0)

    sums = jnp.sum(partials[:, :, 0, :4], axis=1)        # (B, 4)
    pos_w, pos_l = sums[:, 0], sums[:, 1]
    neg0_w, neg0_l = sums[:, 2], sums[:, 3]

    # Dustbin row (weights[:, -1, :n]) is O(B*N): plain JAX, negligible traffic.
    la_row = log_assignment[:, M, :N].astype(jnp.float32)   # (B, N), contiguous
    neg1_mask = gt_matches1 == -1
    num_neg1 = jnp.maximum(jnp.sum(neg1_mask, axis=-1).astype(jnp.float32), 1.0)
    nll_neg1 = -jnp.sum(jnp.where(neg1_mask, la_row, 0.0), axis=-1)

    num_pos = jnp.maximum(pos_w, 1.0)
    nll_pos = -pos_l / num_pos
    num_neg0 = jnp.maximum(neg0_w, 1.0)
    # NOTE: per-term clipped denominators summed (max(n0,1)+max(n1,1)),
    # exactly as in the PyTorch reference -- do not "simplify".
    nll_neg = (-neg0_l + nll_neg1) / (num_neg0 + num_neg1)
    num_neg = (num_neg0 + num_neg1) * 0.5

    nll = nll_balancing * nll_pos + (1.0 - nll_balancing) * nll_neg
    loss = nll.mean() * weight

    # TODO(synk): PyTorch returns .item() python floats in loss_info; we keep
    # JAX scalars / per-batch arrays to stay traceable (no host sync).
    loss_info = {
        "matcher_n_pair_nll": loss,
        "matcher_nll_positive": nll_pos.mean(),
        "matcher_nll_negtive": nll_neg.mean(),
        "matcher_num_matchable": num_pos,
        "matcher_num_unmatchable": num_neg,
    }
    return loss, loss_info


def _reference_forward(log_assignment, gt_matches0, gt_matches1, gt_assignment,
                       weight=1.0, nll_balancing=0.5):
    """Pure-JAX transcription of the PyTorch module, for validation."""
    B, M1, N1 = log_assignment.shape
    m, n = M1 - 1, N1 - 1
    positive = gt_assignment.astype(jnp.float32)
    neg0 = (gt_matches0 == -1).astype(jnp.float32)
    neg1 = (gt_matches1 == -1).astype(jnp.float32)
    weights = jnp.zeros_like(log_assignment)
    weights = weights.at[:, :m, :n].set(positive)
    weights = weights.at[:, :m, -1].set(neg0)
    weights = weights.at[:, -1, :n].set(neg1)

    loss_sc = log_assignment * weights
    num_neg0 = jnp.maximum(weights[:, :m, -1].sum(-1), 1.0)
    num_neg1 = jnp.maximum(weights[:, -1, :n].sum(-1), 1.0)
    num_pos = jnp.maximum(weights[:, :m, :n].sum((-1, -2)), 1.0)
    nll_pos = -loss_sc[:, :m, :n].sum((-1, -2)) / jnp.maximum(num_pos, 1.0)
    nll_neg0 = -loss_sc[:, :m, -1].sum(-1)
    nll_neg1 = -loss_sc[:, -1, :n].sum(-1)
    nll_neg = (nll_neg0 + nll_neg1) / (num_neg0 + num_neg1)
    nll = nll_balancing * nll_pos + (1 - nll_balancing) * nll_neg
    return nll.mean() * weight, nll_pos, nll_neg, num_pos, (num_neg0 + num_neg1) / 2.0


if __name__ == "__main__":
    # Deterministic synthetic module "parameters" (from __init__).
    LOSS_WEIGHT = 2.0
    NLL_BALANCING = 0.5

    B, M, N = 2, 8, 8
    key = jax.random.PRNGKey(0)
    k1, k2, k3, k4 = jax.random.split(key, 4)

    scores = jax.random.normal(k1, (B, M + 1, N + 1), dtype=jnp.float32)
    log_assignment = jax.nn.log_softmax(scores, axis=-1)

    gt_matches0 = jax.random.randint(k2, (B, M), -1, N, dtype=jnp.int32)
    gt_matches1 = jax.random.randint(k3, (B, N), -1, M, dtype=jnp.int32)
    gt_assignment = jax.random.bernoulli(k4, 0.2, (B, M, N))

    loss, loss_info = nll_loss_forward(
        log_assignment, gt_matches0, gt_matches1, gt_assignment,
        weight=LOSS_WEIGHT, nll_balancing=NLL_BALANCING)
    loss = jax.block_until_ready(loss)

    # Validate against a pure-JAX transcription of the PyTorch code.
    ref_loss, ref_np, ref_nn, ref_pos, ref_neg = _reference_forward(
        log_assignment, gt_matches0, gt_matches1, gt_assignment,
        weight=LOSS_WEIGHT, nll_balancing=NLL_BALANCING)
    assert jnp.allclose(loss, ref_loss, rtol=1e-5, atol=1e-5)
    assert jnp.allclose(loss_info["matcher_num_matchable"], ref_pos, rtol=1e-6)
    assert jnp.allclose(loss_info["matcher_num_unmatchable"], ref_neg, rtol=1e-6)
    assert jnp.allclose(loss_info["matcher_nll_positive"], ref_np.mean(), rtol=1e-5, atol=1e-5)
    assert jnp.allclose(loss_info["matcher_nll_negtive"], ref_nn.mean(), rtol=1e-5, atol=1e-5)

    print("KERNEL_OK")
</pallas_src>

<mosaic_0001>
module attributes {stable_mosaic.version = 11 : i64} {
  func.func @_nll_partial_kernel(%arg0: i32, %arg1: i32, %arg2: memref<1x9x9xf32, #tpu.memory_space<vmem>>, %arg3: memref<1x8x8xi32, #tpu.memory_space<vmem>>, %arg4: memref<1x8x1xi32, #tpu.memory_space<vmem>>, %arg5: memref<1x1x1x128xf32, #tpu.memory_space<vmem>>) attributes {dimension_semantics = [#tpu.dimension_semantics<parallel>, #tpu.dimension_semantics<parallel>], iteration_bounds = array<i64: 2, 1>, scalar_prefetch = 0 : i64, scratch_operands = 0 : i64, tpu.core_type = #tpu.core_type<tc>, window_params = [{transform_indices = @transform_0, window_bounds = array<i64: 1, 9, 9>}, {transform_indices = @transform_1, window_bounds = array<i64: 1, 8, 8>}, {transform_indices = @transform_2, window_bounds = array<i64: 1, 8, 1>}, {transform_indices = @transform_3, window_bounds = array<i64: 1, 1, 1, 128>}]} {
    %c0 = arith.constant 0 : index
    %c0_0 = arith.constant 0 : index
    %c0_1 = arith.constant 0 : index
    %0 = vector.load %arg3[%c0, %c0_0, %c0_1] : memref<1x8x8xi32, #tpu.memory_space<vmem>>, vector<1x8x8xi32>
    %1 = vector.shape_cast %0 : vector<1x8x8xi32> to vector<8x8xi32>
    %cst = arith.constant dense<0> : vector<8x8xi32>
    %2 = arith.cmpi ne, %1, %cst : vector<8x8xi32>
    %c0_2 = arith.constant 0 : index
    %c0_3 = arith.constant 0 : index
    %c0_4 = arith.constant 0 : index
    %3 = vector.load %arg4[%c0_2, %c0_3, %c0_4] : memref<1x8x1xi32, #tpu.memory_space<vmem>>, vector<1x8x1xi32>
    %4 = vector.shape_cast %3 : vector<1x8x1xi32> to vector<8x1xi32>
    %c0_5 = arith.constant 0 : index
    %c0_6 = arith.constant 0 : index
    %c0_7 = arith.constant 0 : index
    %5 = vector.load %arg2[%c0_5, %c0_6, %c0_7] : memref<1x9x9xf32, #tpu.memory_space<vmem>>, vector<1x9x9xf32>
    %6 = vector.shape_cast %5 : vector<1x9x9xf32> to vector<9x9xf32>
    %7 = vector.extract_strided_slice %6 {offsets = [0, 0], sizes = [8, 9], strides = [1, 1]} : vector<9x9xf32> to vector<8x9xf32>
    %8 = vector.extract_strided_slice %7 {offsets = [0, 0], sizes = [8, 8], strides = [1, 1]} : vector<8x9xf32> to vector<8x8xf32>
    %9 = vector.extract_strided_slice %7 {offsets = [0, 8], sizes = [8, 1], strides = [1, 1]} : vector<8x9xf32> to vector<8x1xf32>
    %c-1_i32 = arith.constant -1 : i32
    %10 = vector.broadcast %c-1_i32 : i32 to vector<8x1xi32>
    %11 = arith.cmpi eq, %4, %10 : vector<8x1xi32>
    %12 = arith.extui %2 : vector<8x8xi1> to vector<8x8xi32>
    %13 = arith.sitofp %12 : vector<8x8xi32> to vector<8x8xf32>
    %14 = vector.shape_cast %13 : vector<8x8xf32> to vector<1x8x8xf32>
    %cst_8 = arith.constant dense<0.000000e+00> : vector<1xf32>
    %15 = vector.multi_reduction <add>, %14, %cst_8 [1, 2] : vector<1x8x8xf32> to vector<1xf32>
    %16 = vector.shape_cast %15 : vector<1xf32> to vector<1x1x1xf32>
    %17 = vector.extract %16[0, 0, 0] : f32 from vector<1x1x1xf32>
    %18 = vector.broadcast %17 : f32 to vector<1x1xf32>
    %cst_9 = arith.constant 0.000000e+00 : f32
    %19 = vector.broadcast %cst_9 : f32 to vector<8x8xf32>
    %20 = arith.select %2, %8, %19 : vector<8x8xi1>, vector<8x8xf32>
    %21 = vector.shape_cast %20 : vector<8x8xf32> to vector<1x8x8xf32>
    %cst_10 = arith.constant dense<0.000000e+00> : vector<1xf32>
    %22 = vector.multi_reduction <add>, %21, %cst_10 [1, 2] : vector<1x8x8xf32> to vector<1xf32>
    %23 = vector.shape_cast %22 : vector<1xf32> to vector<1x1x1xf32>
    %24 = vector.extract %23[0, 0, 0] : f32 from vector<1x1x1xf32>
    %25 = vector.broadcast %24 : f32 to vector<1x1xf32>
    %26 = arith.extui %11 : vector<8x1xi1> to vector<8x1xi32>
    %27 = arith.sitofp %26 : vector<8x1xi32> to vector<8x1xf32>
    %28 = vector.shape_cast %27 : vector<8x1xf32> to vector<1x8x1xf32>
    %cst_11 = arith.constant dense<0.000000e+00> : vector<1xf32>
    %29 = vector.multi_reduction <add>, %28, %cst_11 [1, 2] : vector<1x8x1xf32> to vector<1xf32>
    %30 = vector.shape_cast %29 : vector<1xf32> to vector<1x1x1xf32>
    %31 = vector.extract %30[0, 0, 0] : f32 from vector<1x1x1xf32>
    %32 = vector.broadcast %31 : f32 to vector<1x1xf32>
    %cst_12 = arith.constant 0.000000e+00 : f32
    %33 = vector.broadcast %cst_12 : f32 to vector<8x1xf32>
    %34 = arith.select %11, %9, %33 : vector<8x1xi1>, vector<8x1xf32>
    %35 = vector.shape_cast %34 : vector<8x1xf32> to vector<1x8x1xf32>
    %cst_13 = arith.constant dense<0.000000e+00> : vector<1xf32>
    %36 = vector.multi_reduction <add>, %35, %cst_13 [1, 2] : vector<1x8x1xf32> to vector<1xf32>
    %37 = vector.shape_cast %36 : vector<1xf32> to vector<1x1x1xf32>
    %38 = vector.extract %37[0, 0, 0] : f32 from vector<1x1x1xf32>
    %39 = vector.broadcast %38 : f32 to vector<1x1xf32>
    %40 = tpu.iota {dimensions = array<i32: 1>} : vector<1x128xi32>
    %c0_i32 = arith.constant 0 : i32
    %41 = vector.broadcast %c0_i32 : i32 to vector<1x128xi32>
    %42 = arith.cmpi eq, %40, %41 : vector<1x128xi32>
    %cst_14 = arith.constant 0.000000e+00 : f32
    %43 = vector.shape_cast %18 : vector<1x1xf32> to vector<1x1xf32>
    %44 = vector.broadcast %43 : vector<1x1xf32> to vector<1x128xf32>
    %45 = vector.broadcast %cst_14 : f32 to vector<1x128xf32>
    %46 = arith.select %42, %44, %45 : vector<1x128xi1>, vector<1x128xf32>
    %c1_i32 = arith.constant 1 : i32
    %47 = vector.broadcast %c1_i32 : i32 to vector<1x128xi32>
    %48 = arith.cmpi eq, %40, %47 : vector<1x128xi32>
    %cst_15 = arith.constant 0.000000e+00 : f32
    %49 = vector.shape_cast %25 : vector<1x1xf32> to vector<1x1xf32>
    %50 = vector.broadcast %49 : vector<1x1xf32> to vector<1x128xf32>
    %51 = vector.broadcast %cst_15 : f32 to vector<1x128xf32>
    %52 = arith.select %48, %50, %51 : vector<1x128xi1>, vector<1x128xf32>
    %53 = arith.addf %46, %52 : vector<1x128xf32>
    %c2_i32 = arith.constant 2 : i32
    %54 = vector.broadcast %c2_i32 : i32 to vector<1x128xi32>
    %55 = arith.cmpi eq, %40, %54 : vector<1x128xi32>
    %cst_16 = arith.constant 0.000000e+00 : f32
    %56 = vector.shape_cast %32 : vector<1x1xf32> to vector<1x1xf32>
    %57 = vector.broadcast %56 : vector<1x1xf32> to vector<1x128xf32>
    %58 = vector.broadcast %cst_16 : f32 to vector<1x128xf32>
    %59 = arith.select %55, %57, %58 : vector<1x128xi1>, vector<1x128xf32>
    %60 = arith.addf %53, %59 : vector<1x128xf32>
    %c3_i32 = arith.constant 3 : i32
    %61 = vector.broadcast %c3_i32 : i32 to vector<1x128xi32>
    %62 = arith.cmpi eq, %40, %61 : vector<1x128xi32>
    %cst_17 = arith.constant 0.000000e+00 : f32
    %63 = vector.shape_cast %39 : vector<1x1xf32> to vector<1x1xf32>
    %64 = vector.broadcast %63 : vector<1x1xf32> to vector<1x128xf32>
    %65 = vector.broadcast %cst_17 : f32 to vector<1x128xf32>
    %66 = arith.select %62, %64, %65 : vector<1x128xi1>, vector<1x128xf32>
    %67 = arith.addf %60, %66 : vector<1x128xf32>
    %c0_18 = arith.constant 0 : index
    %c0_19 = arith.constant 0 : index
    %c0_20 = arith.constant 0 : index
    %c0_21 = arith.constant 0 : index
    %68 = vector.load %arg5[%c0_18, %c0_19, %c0_20, %c0_21] : memref<1x1x1x128xf32, #tpu.memory_space<vmem>>, vector<1x1x1x128xf32>
    %69 = vector.shape_cast %68 : vector<1x1x1x128xf32> to vector<1x128xf32>
    %70 = vector.shape_cast %67 : vector<1x128xf32> to vector<1x1x1x128xf32>
    tpu.vector_store %arg5[%c0_18, %c0_19, %c0_20, %c0_21], %70 {strides = array<i32>} : memref<1x1x1x128xf32, #tpu.memory_space<vmem>>, vector<1x1x1x128xf32>,
    return
  }
  func.func @transform_0(%arg0: i32, %arg1: i32) -> (i32, i32, i32) {
    %c0_i32 = arith.constant 0 : i32
    %c0_i32_0 = arith.constant 0 : i32
    return %arg0, %arg1, %c0_i32 : i32, i32, i32
  }
  func.func @transform_1(%arg0: i32, %arg1: i32) -> (i32, i32, i32) {
    %c0_i32 = arith.constant 0 : i32
    %c0_i32_0 = arith.constant 0 : i32
    return %arg0, %arg1, %c0_i32 : i32, i32, i32
  }
  func.func @transform_2(%arg0: i32, %arg1: i32) -> (i32, i32, i32) {
    %c0_i32 = arith.constant 0 : i32
    %c0_i32_0 = arith.constant 0 : i32
    return %arg0, %arg1, %c0_i32 : i32, i32, i32
  }
  func.func @transform_3(%arg0: i32, %arg1: i32) -> (i32, i32, i32, i32) {
    %c0_i32 = arith.constant 0 : i32
    %c0_i32_0 = arith.constant 0 : i32
    %c0_i32_1 = arith.constant 0 : i32
    return %arg0, %arg1, %c0_i32, %c0_i32_0 : i32, i32, i32, i32
  }
}

</mosaic_0001>

<bundles_post_ra>
// kernel: tpu_custom_call.1
= control target key start
LH: loop header
LB: loop body
LE: loop exit
PB: predicated region body
PF: predicated region fallthrough
CT: control target
= control target key end

     0   :  { %8 = vsyncpa [#allocation3], 0  ;;  %s731_s0 = inlined_call_operand.vmem [shape: f32[2,9,9], index: 0, kind: input, shape index: {}]   ;;  %s732_s1 = inlined_call_operand.vmem [shape: s32[2,8,8], index: 1, kind: input, shape index: {}]   ;;  %s733_s2 = inlined_call_operand.vmem [shape: s32[2,8,1], index: 2, kind: input, shape index: {}]   ;;  %s734_s3 = inlined_call_operand.hbm [shape: f32[2,1,1,128], index: 3, kind: output, shape index: {}]  }
   0x1   :  { %10 = vsyncpa [#allocation3 + $0x1], 0  ;;  %s624_s12 = smov 0   ;;  %s626_s13 = smov 0  }
   0x2   :  { %s628_s14 = smov 0   ;;  %s630_s15 = smov 0  }
   0x3   :  { %s632_s16 = smov 0   ;;  %s634_s17 = smov 0  }
   0x4 LB: > { %s443_s18 = sadd.s32 4294967295, %s599_s17   ;;  %s444_s19 = sadd.s32 4294967294, %s599_s17   ;;  %s599_s17 = sphi %s634_s17, %s16_s17   ;;  %s595_s16 = sphi %s632_s16, %s741_s16   ;;  %s591_s15 = sphi %s630_s15, %s740_s15   ;;  %s587_s14 = sphi %s628_s14, %s739_s14   ;;  %s583_s13 = sphi %s626_s13, %s738_s13   ;;  %s579_s12 = sphi %s624_s12, %s737_s12  }
   0x5   : > { %s28_s20 = sadd.s32 1, %s595_s16  ;;  %s121_s21 = sadd.s32 1, %s587_s14 }
   0x6   : > { %p30_p0 = scmp.ge.s32.totalorder %s28_s20, 2  ;;  %p131_p1 = scmp.ne.s32.totalorder %s587_s14, %s583_s13 }
   0x7   : > { %p132_p2 = scmp.eq.s32.totalorder %s443_s18, 1  ;;  %p137_p3 = scmp.ne.s32.totalorder %s583_s13, %s579_s12 }
   0x8   : > { %s743_s20 = smov (%p30_p0, %s28_s20), 0  ;;  %p138_p5 = scmp.eq.s32.totalorder %s444_s19, 1 }
   0x9   : > { %p664_p4 = por %p132_p2, %p131_p1  ;;  %s116_s23 = ssub.s32 %s595_s16, %s743_s20 }
   0xa   : > { %p447_p6 = scmp.ge.s32.totalorder %s599_s17, 1  ;;  %p119_p7 = scmp.eq.s32.totalorder %s116_s23, 0 }
   0xb   : > { %p671_p8 = por %p138_p5, %p137_p3  ;;  %p189_p9 = scmp.lt.s32.totalorder %s599_s17, 3 }
   0xc   : > { %s677_s25 = scalar_select %p119_p7, %s587_s14, %s121_s21  }
   0xd   : > { %p190_p10 = pnand %p447_p6, %p189_p9 }
   0xe   : > { %p231_p11 = scmp.lt.s32.totalorder (!%p190_p10), %s591_s15, 1  ;;  %s601_s11 = smov (!%p190_p10), 120  }
   0xf   : > { %193 = sbr.rel (%p190_p10) target bundleno = 359 (0x167), region = 32  ;;  %s228_s23 = sand.u32 (!%p190_p10), 1, %s583_s13  }
  0x10   : > { %s330_s6 = scalar_lea.sflag (!%p190_p10), [#allocation3], %s228_s23 }
  0x14   : > { %s232_s26 = scalar_select %p231_p11, %s591_s15, 1  ;;  %vm261_vm0 = vcmask 64512   ;;  %vm285_vm3 = vcmask 7168   ;;  %v602_v5 = vmov 0.0   ;;  %v311_v41 = vlaneseq }
  0x16   : > { %s457_s27 = sshll.u32 %s232_s26, 4  ;;  %s450_s28 = sshll.u32 %s232_s26, 3  ;;  %v312_v42 = vand.u32 127, %v311_v41 }
  0x17   : > { %s238_s4 = scalar_lea.vmem %s731_s0, %s457_s27  ;;  %s246_s7 = scalar_lea.vmem %s732_s1, %s450_s28 }
  0x18   : > { %v257_v0 = vld [vmem:[%s238_s4] sm:$0xff]  ;;  %s253_s10 = scalar_lea.vmem %s733_s2, %s450_s28  ;;  %vm313_vm4 = vcmp.eq.s32.totalorder %v312_v42, 0  ;;  %vm316_vm5 = vcmp.eq.s32.totalorder %v312_v42, 1  ;;  %vm320_vm6 = vcmp.eq.s32.totalorder %v312_v42, 2  ;;  %vm324_vm7 = vcmp.eq.s32.totalorder %v312_v42, 3  ;;  %s454_s26 = sshll.u32 %s591_s15, 4 }
  0x19   : > { %v254_v1 = vld [vmem:[%s246_s7] sm:$0xff]  ;;  %297 = vrot.lane.b32.xlu0 %v257_v0, %s601_s11  ;;  %s229_s28 = scalar_lea.vmem [#allocation2], %s228_s23  ;;  %s341_s5 = scalar_lea.hbm %s734_s3, %s454_s26 }
  0x1a   : > { %vm255_vm1 = vcmp.ne.s32.totalorder %v254_v1, 0  ;;  %v256_v2 = vld [vmem:[%s253_s10] sm:$0xff]  ;;  %s343_s29 = sshll.u32 %s229_s28, 4  ;;  %s603_s15 = smov [#allocation2]   ;;  %s344_s29 = int_to_ptr.vmem [resolvable:$true] %s343_s29 }
  0x1b   : > { %v272_v3 = vsel %vm255_vm1, %v257_v0, 0.0  ;;  %vm258_vm2 = vcmp.eq.s32.totalorder %v256_v2, 4294967295  ;;  %v452_v8 = vsel %vm255_vm1, 1.0, %v602_v5  ;;  %s523_s7 = scalar_lea.vmem %s344_s29, 16  ;;  %s527_s8 = sshll.u32 %s603_s15, 4  ;;  %s528_s8 = int_to_ptr.vmem [resolvable:$false] %s527_s8 }
  0x1c   : > { %v273_v4 = vsel %vm261_vm0, %v272_v3, 0.0  ;;  %v453_v6 = vsel %vm258_vm2, 1.0, %v602_v5  ;;  %v262_v9 = vsel %vm261_vm0, %v452_v8, 0.0  ;;  %p524_p12 = scmp.ne.s32.totalorder %s344_s29, %s523_s7  ;;  %s529_s9 = scalar_lea.vmem %s528_s8, 32 }
  0x1d   : > { %274 = vadd.xlane.f32.xlu1 %v273_v4  ;;  %v286_v7 = vsel %vm285_vm3, %v453_v6, 0.0  ;;  %p530_p1 = scmp.lt.s32.totalorder %s344_s29, %s528_s8  ;;  %p531_p2 = scmp.lt.s32.totalorder %s529_s9, %s523_s7 }
  0x1e   : > { %p525_p13 = pnand %p524_p12, %p664_p4 }
  0x1f   : > { %p532_p3 = por %p531_p2, %p530_p1 }
  0x20   : > { %p526_p0 = pneg %p525_p13 }
  0x21   : > { %287 = vadd.xlane.f32.xlu1 %v286_v7 }
  0x22   : > { %p533_p5 = pnand %p532_p3, %p526_p0 }
  0x38   : > { %263 = vadd.xlane.f32.xlu0 %v262_v9 }
  0x8b   : > { %v298_v10 = vpop.permute.xlu0 %297 }
  0x8c   : > { %v300_v11 = vsel %vm258_vm2, %v298_v10, 0.0 }
  0x8d   : > { %v301_v12 = vsel %vm285_vm3, %v300_v11, 0.0 }
  0x8e   : > { %302 = vadd.xlane.f32.xlu1 %v301_v12 }
  0xa6   : > { %v275_v13 = vpop.xlane.xlu1 %274 }
  0xa7   : > { %v276_v15 = vrot.slane %v275_v13, 4 }
  0xa9   : > { %v277_v17 = vadd.f32 %v276_v15, %v275_v13 }
  0xaa   : > { %v288_v14 = vpop.xlane.xlu1 %287 }
  0xab   : > { %v289_v16 = vrot.slane %v288_v14, 4  ;;  %v278_v19 = vrot.slane %v277_v17, 2 }
  0xad   : > { %v290_v18 = vadd.f32 %v289_v16, %v288_v14  ;;  %v279_v23 = vadd.f32 %v278_v19, %v277_v17 }
  0xaf   : > { %v291_v20 = vrot.slane %v290_v18, 2  ;;  %v280_v27 = vrot.slane %v279_v23, 1 }
  0xb1   : > { %v292_v25 = vadd.f32 %v291_v20, %v290_v18  ;;  %v281_v31 = vadd.f32 %v280_v27, %v279_v23 }
  0xb3   : > { %v293_v29 = vrot.slane %v292_v25, 1 }
  0xb5   : > { %v294_v33 = vadd.f32 %v293_v29, %v292_v25 }
  0xc1   : > { %v264_v21 = vpop.xlane.xlu0 %263 }
  0xc2   : > { %v265_v22 = vrot.slane %v264_v21, 4 }
  0xc4   : > { %v266_v24 = vadd.f32 %v265_v22, %v264_v21 }
  0xc6   : > { %v267_v26 = vrot.slane %v266_v24, 2 }
  0xc8   : > { %v268_v28 = vadd.f32 %v267_v26, %v266_v24 }
  0xca   : > { %v269_v30 = vrot.slane %v268_v28, 1 }
  0xcc   : > { %v270_v32 = vadd.f32 %v269_v30, %v268_v28 }
  0xce   : > { %458 = vpush %v270_v32 }
  0xcf   : > { %460 = vpush %v281_v31 }
  0xd0   : > { %462 = vpush %v294_v33 }
  0xff   : > { %s459_s18 = spop %458 }
 0x100   : > { %s461_s19 = spop %460  ;;  %v314_v43 = vstv %s459_s18 }
 0x101   : > { %v317_v44 = vstv %s461_s19  ;;  %s463_s21 = spop %462  ;;  %v315_v45 = vsel %vm313_vm4, %v314_v43, 0.0 }
 0x102   : > { %v318_v46 = vsel %vm316_vm5, %v317_v44, 0.0  ;;  %v321_v47 = vstv %s463_s21 }
 0x103   : > { %v319_v48 = vadd.f32 %v318_v46, %v315_v45  ;;  %v322_v49 = vsel %vm320_vm6, %v321_v47, 0.0 }
 0x105   : > { %v323_v50 = vadd.f32 %v322_v49, %v319_v48 }
 0x117   : > { %v303_v34 = vpop.xlane.xlu1 %302 }
 0x118   : > { %v304_v35 = vrot.slane %v303_v34, 4 }
 0x11a   : > { %v305_v36 = vadd.f32 %v304_v35, %v303_v34 }
 0x11c   : > { %v306_v37 = vrot.slane %v305_v36, 2 }
 0x11e   : > { %v307_v38 = vadd.f32 %v306_v37, %v305_v36 }
 0x120   : > { %v308_v39 = vrot.slane %v307_v38, 1 }
 0x122   : > { %v309_v40 = vadd.f32 %v308_v39, %v307_v38 }
 0x124   : > { %464 = vpush %v309_v40 }
 0x155   : > { %s465_s27 = spop %464 }
 0x156   : > { %v325_v51 = vstv %s465_s27 }
 0x157   : > { %v326_v52 = vsel %vm324_vm7, %v325_v51, 0.0 }
 0x158   : > { %v327_v53 = vadd.f32 %v326_v52, %v323_v50 }
 0x15a   : > { %328 = vst [vmem:[%s229_s28] sm:$0x1] %v327_v53 }
 0x15b   : > { %536 = shalt.err (!%p533_p5)
}
 0x15c   : > { %s537_s10 = scalar_lea.hbm %s341_s5, 16  ;;  %s541_s19 = scalar_lea.hbm %s734_s3, 32 }
 0x15d   : > { %p538_p6 = scmp.ne.s32.totalorder %s341_s5, %s537_s10  ;;  %p542_p10 = scmp.lt.s32.totalorder %s341_s5, %s734_s3 }
 0x15e   : > { %p543_p11 = scmp.lt.s32.totalorder %s541_s19, %s537_s10 }
 0x15f   : > { %p539_p7 = pnand %p538_p6, %p664_p4 }
 0x160   : > { %p544_p12 = por %p543_p11, %p542_p10 }
 0x161   : > { %p540_p9 = pneg %p539_p7 }
 0x163   : > { %p545_p13 = pnand %p544_p12, %p540_p9 }
 0x165   : > { %548 = shalt.err (!%p545_p13)
}
 0x166   : > { %466 = dma.vmem_to_hbm [thread:$0]  (%p664_p4), %s344_s29, 16, %s341_s5, %s330_s6  }
 0x167 PF: > { %p472_p0 = scmp.ge.s32.totalorder %s599_s17, 2  ;;  %s355_s26 = sand.u32 1, %s579_s12  }
 0x168   : > { %s356_s27 = scalar_lea.sflag [#allocation3], %s355_s26 }
 0x169   : > { %p469_p1 = pnand %p472_p0, %p671_p8 }
 0x16b   : > { %p470_p2 = pneg %p469_p1 }
 0x16d   : > { %574 = dma.done.wait (%p470_p2), %s356_s27, 16  }
 0x16e   : > { %576 = vsyncadd (%p470_p2), %s356_s27, 4294967280  ;;  %s16_s17 = sadd.s32 1, %s599_s17   ;;  %s737_s12 = smov %s583_s13 }
 0x16f   : > { %p13_p3 = scmp.ge.s32.totalorder %s16_s17, 4   ;;  %s738_s13 = smov %s587_s14 }
 0x170   : > { %s739_s14 = smov %s677_s25  ;;  %s740_s15 = smov %s595_s16 }
 0x171   : > { %s741_s16 = smov %s743_s20  ;;  %15 = sbr.rel (!%p13_p3) target bundleno = 4 (0x4), region = 73 }
 0x176   :  { %360 = vsyncpa [#allocation3], 1 }
 0x177   :  { %362 = vsyncpa [#allocation3 + $0x1], 1 }

</bundles_post_ra>
